<compile_context>
chip_gen: v5e
topology: v5e:2x2
jax: 0.10.0
libtpu: 0.0.40
codegen_flags: <defaults>
</compile_context>

<pallas_src>
import functools

import jax
import jax.numpy as jnp
from jax import lax
from jax.experimental import pallas as pl
from jax.experimental.pallas import tpu as pltpu

TINY_NUMBER = 1e-6
_LANE = 128


def _class_sums_kernel(seg_ref, imgt_ref, out_ref, *, n_pix, tile_pix, channels,
                       steps_per_chunk, num_steps_padded):
    """out[ci, k, ch] += sum_p seg[k,p]*img[ch,p];  out[ci, k, c] += sum_p seg[k,p]."""
    ci = pl.program_id(0)
    st = pl.program_id(1)
    gstep = ci * steps_per_chunk + st

    @pl.when(st == 0)
    def _():
        out_ref[...] = jnp.zeros_like(out_ref)

    def accumulate(seg, imgt):
        # Pure VPU MAC + one tiny cross-lane reduce per channel (no MXU push).
        cols = [jnp.sum(seg * imgt[ch:ch + 1, :], axis=1, keepdims=True)
                for ch in range(channels)]
        cols.append(jnp.sum(seg, axis=1, keepdims=True))          # denominator
        out_ref[...] += jnp.concatenate(cols, axis=1)[None]       # (1, classes, c+1)

    n_full = n_pix // tile_pix
    if num_steps_padded == n_full:                 # static: every tile fully valid
        accumulate(seg_ref[...].astype(jnp.float32),
                   imgt_ref[...].astype(jnp.float32))
    else:
        @pl.when(gstep < n_full)                   # full tiles: no masking cost
        def _():
            accumulate(seg_ref[...].astype(jnp.float32),
                       imgt_ref[...].astype(jnp.float32))

        @pl.when(gstep >= n_full)                  # tail / phantom tiles: mask BOTH
        def _():
            rem = n_pix - gstep * tile_pix         # <= 0 on phantom steps
            offs = lax.broadcasted_iota(jnp.int32, (1, tile_pix), 1)
            valid = offs < rem
            seg = jnp.where(valid, seg_ref[...].astype(jnp.float32), 0.0)
            imgt = jnp.where(valid, imgt_ref[...].astype(jnp.float32), 0.0)
            accumulate(seg, imgt)


def _l1_partial_kernel(seg_ref, imgt_ref, mean_ref, acc_ref, *, n_pix, tile_pix,
                       channels, steps_per_chunk, num_steps_padded):
    """acc[ci, k, 0] += sum_{p,ch} | seg[k,p] * (img[ch,p] - mean[k,ch]) |  (pure VPU)."""
    ci = pl.program_id(0)
    st = pl.program_id(1)
    gstep = ci * steps_per_chunk + st

    @pl.when(st == 0)
    def _():
        acc_ref[...] = jnp.zeros_like(acc_ref)

    mean = mean_ref[...].astype(jnp.float32)       # (classes, c)

    def accumulate(seg, imgt):
        total = None
        for ch in range(channels):                 # channels is tiny & static
            diff = imgt[ch:ch + 1, :] - mean[:, ch:ch + 1]        # (classes, TP)
            term = jnp.abs(seg * diff)
            total = term if total is None else total + term
        acc_ref[...] += jnp.sum(total, axis=1, keepdims=True)[None]   # (1, classes, 1)

    n_full = n_pix // tile_pix
    if num_steps_padded == n_full:
        accumulate(seg_ref[...].astype(jnp.float32),
                   imgt_ref[...].astype(jnp.float32))
    else:
        @pl.when(gstep < n_full)
        def _():
            accumulate(seg_ref[...].astype(jnp.float32),
                       imgt_ref[...].astype(jnp.float32))

        @pl.when(gstep >= n_full)
        def _():
            rem = n_pix - gstep * tile_pix
            offs = lax.broadcasted_iota(jnp.int32, (1, tile_pix), 1)
            valid = offs < rem
            seg = jnp.where(valid, seg_ref[...].astype(jnp.float32), 0.0)
            imgt = jnp.where(valid, imgt_ref[...].astype(jnp.float32), 0.0)
            accumulate(seg, imgt)


def _vmem_limit_bytes():
    cap = 64 * 1024 * 1024                        # conservative fallback (v7x)
    try:
        cap = int(pltpu.get_tpu_info().vmem_capacity_bytes)
    except Exception:
        pass
    # Leave headroom below physical capacity; don't ask for more than ~96 MiB.
    return int(max(32 * 1024 * 1024, min(cap - 16 * 1024 * 1024, 96 * 1024 * 1024)))


def _pick_tile(n_pix, classes, vmem_limit, tile_pixels=None):
    if tile_pixels is None:
        # Size the tile from the f32 compute footprint (independent of the
        # streaming dtype of seg_mask); ~12x headroom covers double-buffered
        # inputs, the f32 copies, and pass-2 elementwise temporaries.
        budget = vmem_limit // 12
        tp = budget // max(1, classes * 4)
    else:
        tp = tile_pixels
    tp = max(_LANE, (tp // _LANE) * _LANE)
    return n_pix if n_pix <= tp else tp


def seg_loss(img, seg_mask, floor_max_mask=None, img_womipmap=None, mode=0,
             valid_mask=None, room_seg_mask=None, seg_loss_weight=1.0,
             tile_pixels=None):
    """SegLoss.forward (mode == 0). img: [b,h,w,c]; seg_mask: [classes,b,h,w,1]."""
    if mode != 0:
        # TODO(synk): modes 1 (torch.quantile + per-class .item() host control flow)
        # and 2 (room_seg_mask weighting) are not translated; only mode=0 is.
        raise NotImplementedError("Only mode == 0 is implemented in Pallas.")

    b, h, w, c = img.shape
    classes = seg_mask.shape[0]
    assert seg_mask.shape == (classes, b, h, w, 1)
    n_pix = b * h * w

    # Large tensor: reshape only (free), streamed in its native dtype
    # (bf16/int8 masks stream at half/quarter the HBM traffic; f32 copy is in-kernel).
    seg2d = seg_mask.reshape(classes, n_pix)                      # (classes, P)
    # Small image tensor: channels-first so each row is lane-dense in the kernel.
    imgt = jnp.transpose(img.reshape(n_pix, c))                   # (c, P)

    vmem_limit = _vmem_limit_bytes()
    tp = _pick_tile(n_pix, classes, vmem_limit, tile_pixels)

    total_steps = pl.cdiv(n_pix, tp)
    num_chunks = 2 if total_steps >= 2 else 1      # feed both v7x TensorCores
    spc = pl.cdiv(total_steps, num_chunks)         # streaming steps per chunk
    padded_steps = num_chunks * spc                # may include 1 phantom step
    last_block = total_steps - 1

    grid = (num_chunks, spc)
    cparams = pltpu.CompilerParams(
        dimension_semantics=("parallel", "arbitrary"),
        vmem_limit_bytes=vmem_limit)

    def pix_map(ci, st):
        g = ci * spc + st
        return (0, jnp.minimum(g, last_block))     # clamp phantom steps (masked to 0)

    common = dict(n_pix=n_pix, tile_pix=tp, channels=c,
                  steps_per_chunk=spc, num_steps_padded=padded_steps)

    # Pass 1: per-class weighted sums + mask sums (VPU MAC into a tiny resident acc).
    sums = pl.pallas_call(
        functools.partial(_class_sums_kernel, **common),
        out_shape=jax.ShapeDtypeStruct((num_chunks, classes, c + 1), jnp.float32),
        grid=grid,
        in_specs=[
            pl.BlockSpec((classes, tp), pix_map),
            pl.BlockSpec((c, tp), pix_map),
        ],
        out_specs=pl.BlockSpec((1, classes, c + 1), lambda ci, st: (ci, 0, 0)),
        compiler_params=cparams,
    )(seg2d, imgt)

    sums = jnp.sum(sums, axis=0)                                  # (classes, c+1)
    mean_img = sums[:, :c] / (sums[:, c:c + 1] + TINY_NUMBER)     # (classes, c)

    # Pass 2: L1 numerator; per-tile lane reduction straight into a (classes, 1)
    # per-chunk resident accumulator (pure VPU; final combine in the wrapper).
    l1_partial = pl.pallas_call(
        functools.partial(_l1_partial_kernel, **common),
        out_shape=jax.ShapeDtypeStruct((num_chunks, classes, 1), jnp.float32),
        grid=grid,
        in_specs=[
            pl.BlockSpec((classes, tp), pix_map),
            pl.BlockSpec((c, tp), pix_map),
            pl.BlockSpec((classes, c), lambda ci, st: (0, 0)),
        ],
        out_specs=pl.BlockSpec((1, classes, 1), lambda ci, st: (ci, 0, 0)),
        compiler_params=cparams,
    )(seg2d, imgt, mean_img)

    n_elems = classes * b * h * w * c
    loss = jnp.sum(l1_partial) / jnp.float32(n_elems)
    return jnp.float32(seg_loss_weight) * loss


def _seg_loss_reference(img, seg_mask, seg_loss_weight=1.0):
    """Pure-JAX mirror of the PyTorch mode==0 path."""
    b, h, w, c = img.shape
    classes = seg_mask.shape[0]
    seg = seg_mask.reshape(classes, b, h * w, 1).astype(jnp.float32)
    img_segs = jnp.broadcast_to(
        img.reshape(1, b, h * w, c).astype(jnp.float32), (classes, b, h * w, c))
    num = jnp.sum((img_segs * seg).reshape(classes, -1, c), axis=1, keepdims=True)
    den = jnp.sum(seg.reshape(classes, -1, 1), axis=1, keepdims=True) + TINY_NUMBER
    mean_img = num / den                                          # (classes, 1, c)
    loss = jnp.mean(jnp.abs(img_segs * seg - mean_img[:, :, None, :] * seg))
    return seg_loss_weight * loss


if __name__ == "__main__":
    key = jax.random.PRNGKey(0)
    k1, k2, k3, k4, k5, k6 = jax.random.split(key, 6)

    # 1) Small shapes consistent with the module: img [b,h,w,c], seg_mask [classes,b,h,w,1]
    b, h, w, c, classes = 2, 16, 16, 3, 6
    img = jax.random.uniform(k1, (b, h, w, c), dtype=jnp.float32)
    seg_mask = jax.random.uniform(k2, (classes, b, h, w, 1), dtype=jnp.float32)
    loss = jax.block_until_ready(seg_loss(img, seg_mask))
    loss_ref = _seg_loss_reference(img, seg_mask)
    assert jnp.allclose(loss, loss_ref, rtol=1e-4, atol=1e-6), (loss, loss_ref)

    # 2) Multi-tile path: tail masking + 2-chunk parallel split (P = 450, tile = 128).
    img2 = jax.random.uniform(k3, (2, 15, 15, 3), dtype=jnp.float32)
    seg2 = jax.random.uniform(k4, (5, 2, 15, 15, 1), dtype=jnp.float32)
    loss2 = jax.block_until_ready(seg_loss(img2, seg2, tile_pixels=128))
    loss2_ref = _seg_loss_reference(img2, seg2)
    assert jnp.allclose(loss2, loss2_ref, rtol=1e-4, atol=1e-6), (loss2, loss2_ref)

    # 3) Odd step count: exercises the clamped phantom step in the chunked grid
    #    (P = 320, tile = 128 -> 3 real steps split as 2+2 with one masked phantom).
    img3 = jax.random.uniform(k5, (1, 16, 20, 3), dtype=jnp.float32)
    seg3 = jax.random.uniform(k6, (4, 1, 16, 20, 1), dtype=jnp.float32)
    loss3 = jax.block_until_ready(seg_loss(img3, seg3, tile_pixels=128))
    loss3_ref = _seg_loss_reference(img3, seg3)
    assert jnp.allclose(loss3, loss3_ref, rtol=1e-4, atol=1e-6), (loss3, loss3_ref)

    print("KERNEL_OK")
</pallas_src>

<mosaic_0001>
module attributes {stable_mosaic.version = 11 : i64} {
  func.func @_class_sums_kernel(%arg0: i32, %arg1: i32, %arg2: memref<6x512xf32, #tpu.memory_space<vmem>>, %arg3: memref<3x512xf32, #tpu.memory_space<vmem>>, %arg4: memref<1x6x4xf32, #tpu.memory_space<vmem>>) attributes {dimension_semantics = [#tpu.dimension_semantics<parallel>, #tpu.dimension_semantics<arbitrary>], iteration_bounds = array<i64: 1, 1>, scalar_prefetch = 0 : i64, scratch_operands = 0 : i64, tpu.core_type = #tpu.core_type<tc>, window_params = [{transform_indices = @transform_0, window_bounds = array<i64: 6, 512>}, {transform_indices = @transform_1, window_bounds = array<i64: 3, 512>}, {transform_indices = @transform_2, window_bounds = array<i64: 1, 6, 4>}]} {
    %c0_i32 = arith.constant 0 : i32
    %0 = arith.cmpi eq, %arg1, %c0_i32 : i32
    %1 = arith.extui %0 : i1 to i32
    %c0_i32_0 = arith.constant 0 : i32
    %2 = arith.cmpi ne, %1, %c0_i32_0 : i32
    scf.if %2 {
      %cst_13 = arith.constant 0.000000e+00 : f32
      %27 = vector.broadcast %cst_13 : f32 to vector<1x6x4xf32>
      %c0_14 = arith.constant 0 : index
      %c0_15 = arith.constant 0 : index
      %c0_16 = arith.constant 0 : index
      %28 = vector.load %arg4[%c0_14, %c0_15, %c0_16] : memref<1x6x4xf32, #tpu.memory_space<vmem>>, vector<1x6x4xf32>
      tpu.vector_store %arg4[%c0_14, %c0_15, %c0_16], %27 {strides = array<i32>} : memref<1x6x4xf32, #tpu.memory_space<vmem>>, vector<1x6x4xf32>,
    } else {
    }
    %c0 = arith.constant 0 : index
    %c0_1 = arith.constant 0 : index
    %3 = vector.load %arg2[%c0, %c0_1] : memref<6x512xf32, #tpu.memory_space<vmem>>, vector<6x512xf32>
    %c0_2 = arith.constant 0 : index
    %c0_3 = arith.constant 0 : index
    %4 = vector.load %arg3[%c0_2, %c0_3] : memref<3x512xf32, #tpu.memory_space<vmem>>, vector<3x512xf32>
    %5 = vector.extract_strided_slice %4 {offsets = [0, 0], sizes = [1, 512], strides = [1, 1]} : vector<3x512xf32> to vector<1x512xf32>
    %6 = vector.broadcast %5 : vector<1x512xf32> to vector<6x512xf32>
    %7 = arith.mulf %3, %6 : vector<6x512xf32>
    %cst = arith.constant dense<0.000000e+00> : vector<6xf32>
    %8 = vector.multi_reduction <add>, %7, %cst [1] : vector<6x512xf32> to vector<6xf32>
    %9 = vector.shape_cast %8 : vector<6xf32> to vector<6x1xf32>
    %10 = vector.extract_strided_slice %4 {offsets = [1, 0], sizes = [1, 512], strides = [1, 1]} : vector<3x512xf32> to vector<1x512xf32>
    %11 = vector.broadcast %10 : vector<1x512xf32> to vector<6x512xf32>
    %12 = arith.mulf %3, %11 : vector<6x512xf32>
    %cst_4 = arith.constant dense<0.000000e+00> : vector<6xf32>
    %13 = vector.multi_reduction <add>, %12, %cst_4 [1] : vector<6x512xf32> to vector<6xf32>
    %14 = vector.shape_cast %13 : vector<6xf32> to vector<6x1xf32>
    %15 = vector.extract_strided_slice %4 {offsets = [2, 0], sizes = [1, 512], strides = [1, 1]} : vector<3x512xf32> to vector<1x512xf32>
    %16 = vector.broadcast %15 : vector<1x512xf32> to vector<6x512xf32>
    %17 = arith.mulf %3, %16 : vector<6x512xf32>
    %cst_5 = arith.constant dense<0.000000e+00> : vector<6xf32>
    %18 = vector.multi_reduction <add>, %17, %cst_5 [1] : vector<6x512xf32> to vector<6xf32>
    %19 = vector.shape_cast %18 : vector<6xf32> to vector<6x1xf32>
    %cst_6 = arith.constant dense<0.000000e+00> : vector<6xf32>
    %20 = vector.multi_reduction <add>, %3, %cst_6 [1] : vector<6x512xf32> to vector<6xf32>
    %21 = vector.shape_cast %20 : vector<6xf32> to vector<6x1xf32>
    %c0_7 = arith.constant 0 : index
    %c0_8 = arith.constant 0 : index
    %c0_9 = arith.constant 0 : index
    %22 = vector.load %arg4[%c0_7, %c0_8, %c0_9] : memref<1x6x4xf32, #tpu.memory_space<vmem>>, vector<1x6x4xf32>
    %23 = tpu.concatenate %9, %14, %19, %21 in 1 : vector<6x1xf32>, vector<6x1xf32>, vector<6x1xf32>, vector<6x1xf32> -> vector<6x4xf32>
    %24 = vector.shape_cast %23 : vector<6x4xf32> to vector<1x6x4xf32>
    %25 = arith.addf %22, %24 : vector<1x6x4xf32>
    %c0_10 = arith.constant 0 : index
    %c0_11 = arith.constant 0 : index
    %c0_12 = arith.constant 0 : index
    %26 = vector.load %arg4[%c0_10, %c0_11, %c0_12] : memref<1x6x4xf32, #tpu.memory_space<vmem>>, vector<1x6x4xf32>
    tpu.vector_store %arg4[%c0_10, %c0_11, %c0_12], %25 {strides = array<i32>} : memref<1x6x4xf32, #tpu.memory_space<vmem>>, vector<1x6x4xf32>,
    return
  }
  func.func @transform_0(%arg0: i32, %arg1: i32) -> (i32, i32) {
    %c1_i32 = arith.constant 1 : i32
    %0 = arith.muli %arg0, %c1_i32 : i32
    %1 = arith.addi %0, %arg1 : i32
    %c0_i32 = arith.constant 0 : i32
    %2 = arith.minsi %1, %c0_i32 : i32
    %c0_i32_0 = arith.constant 0 : i32
    %c0_i32_1 = arith.constant 0 : i32
    return %c0_i32_0, %2 : i32, i32
  }
  func.func @transform_1(%arg0: i32, %arg1: i32) -> (i32, i32) {
    %c1_i32 = arith.constant 1 : i32
    %0 = arith.muli %arg0, %c1_i32 : i32
    %1 = arith.addi %0, %arg1 : i32
    %c0_i32 = arith.constant 0 : i32
    %2 = arith.minsi %1, %c0_i32 : i32
    %c0_i32_0 = arith.constant 0 : i32
    %c0_i32_1 = arith.constant 0 : i32
    return %c0_i32_0, %2 : i32, i32
  }
  func.func @transform_2(%arg0: i32, %arg1: i32) -> (i32, i32, i32) {
    %c0_i32 = arith.constant 0 : i32
    %c0_i32_0 = arith.constant 0 : i32
    %c0_i32_1 = arith.constant 0 : i32
    return %arg0, %c0_i32, %c0_i32_0 : i32, i32, i32
  }
}

</mosaic_0001>

<bundles_post_ra>
// kernel: tpu_custom_call.1
= control target key start
LH: loop header
LB: loop body
LE: loop exit
PB: predicated region body
PF: predicated region fallthrough
CT: control target
= control target key end

     0   :  { %7 = vsyncpa [#allocation3], 0  ;;  %s282_s0 = inlined_call_operand.hbm [shape: f32[6,512], index: 0, kind: input, shape index: {}]   ;;  %s283_s1 = inlined_call_operand.hbm [shape: f32[3,512], index: 1, kind: input, shape index: {}]   ;;  %s284_s2 = inlined_call_operand.vmem [shape: f32[1,6,4], index: 2, kind: output, shape index: {}]  }
   0x1   :  { %s20_s11 = sshll.u32 %s282_s0, 4  ;;  %s21_s11 = int_to_ptr.hbm [resolvable:$true] %s20_s11 }
   0x2   :  { %8 = vsyncpa [#allocation5], 0  ;;  %s233_s12 = smov [#allocation2]   ;;  %s37_s16 = sshll.u32 %s283_s1, 4  ;;  %s38_s16 = int_to_ptr.hbm [resolvable:$true] %s37_s16 }
   0x3   :  { %s22_s13 = sshll.u32 %s233_s12, 4  ;;  %s234_s17 = smov [#allocation4]   ;;  %s23_s13 = int_to_ptr.vmem [resolvable:$true] %s22_s13 }
   0x4   :  { %25 = dma.hbm_to_vmem [thread:$0]  %s21_s11, 512, %s23_s13, [#allocation3]  }
   0x5   :  { %s39_s18 = sshll.u32 %s234_s17, 4  ;;  %s40_s18 = int_to_ptr.vmem [resolvable:$true] %s39_s18 }
   0x6   :  { %42 = dma.hbm_to_vmem [thread:$0]  %s38_s16, 256, %s40_s18, [#allocation5]  }
   0x7   :  { %229 = dma.done.wait [#allocation3], 512  }
   0x8   :  { %230 = vsyncadd [#allocation3], 4294966784 }
   0x9   :  { %231 = dma.done.wait [#allocation5], 256  }
   0xa   :  { %232 = vsyncadd [#allocation5], 4294967040  ;;  %vm89_vm0 = vcmask 1045504   ;;  %v65_v0 = vld [vmem:[#allocation2] sm:$0x3f]  ;;  %vm63_vm1 = vcmask 29696  }
   0xb   :  { %v66_v1 = vld [vmem:[#allocation2 + $0x8] sm:$0x3f]  ;;  %v69_v2 = vld [vmem:[#allocation4] sm:$0x77]  ;;  %v67_v4 = vld [vmem:[#allocation2 + $0x10] sm:$0x3f] }
   0xc   :  { %v70_v3 = vld [vmem:[#allocation4 + $0x8] sm:$0x77]  ;;  %v73_v5 = vperm.slane %v69_v2, 0  ;;  %v74_v6 = vperm.slane %v69_v2, 4  ;;  %v68_v9 = vld [vmem:[#allocation2 + $0x18] sm:$0x3f] }
   0xd   :  { %v75_v7 = vperm.slane %v70_v3, 0  ;;  %v76_v8 = vperm.slane %v70_v3, 4  ;;  %v124_v10 = vperm.slane %v69_v2, 2  ;;  %v125_v11 = vperm.slane %v69_v2, 6 }
   0xe   :  { %v126_v12 = vperm.slane %v70_v3, 2  ;;  %v127_v13 = vperm.slane %v70_v3, 6  ;;  %v81_v14 = vperm.slane %v73_v5, 0  ;;  %v82_v15 = vperm.slane %v74_v6, 0 }
   0xf   :  { %v83_v16 = vperm.slane %v75_v7, 0  ;;  %v84_v17 = vperm.slane %v76_v8, 0  ;;  %v132_v18 = vperm.slane %v124_v10, 2  ;;  %v133_v19 = vperm.slane %v125_v11, 2 }
  0x10   :  { %v134_v20 = vperm.slane %v126_v12, 2  ;;  %v135_v21 = vperm.slane %v127_v13, 2  ;;  %v85_v22 = vmul.f32 %v81_v14, %v65_v0  ;;  %v86_v23 = vmul.f32 %v82_v15, %v66_v1 }
  0x11   :  { %v87_v24 = vmul.f32 %v83_v16, %v67_v4  ;;  %v88_v25 = vmul.f32 %v84_v17, %v68_v9  ;;  %v136_v26 = vmul.f32 %v132_v18, %v65_v0  ;;  %v137_v27 = vmul.f32 %v133_v19, %v66_v1 }
  0x12   :  { %v138_v28 = vmul.f32 %v134_v20, %v67_v4  ;;  %v139_v29 = vmul.f32 %v135_v21, %v68_v9  ;;  %v90_v30 = vsel %vm89_vm0, %v85_v22, 0.0  ;;  %v91_v31 = vsel %vm89_vm0, %v86_v23, 0.0 }
  0x13   :  { %v93_v32 = vsel %vm89_vm0, %v87_v24, 0.0  ;;  %v95_v33 = vsel %vm89_vm0, %v88_v25, 0.0  ;;  %v92_v34 = vadd.f32 %v91_v31, %v90_v30  ;;  %v140_v35 = vsel %vm89_vm0, %v136_v26, 0.0 }
  0x14   :  { %v141_v36 = vsel %vm89_vm0, %v137_v27, 0.0  ;;  %v143_v37 = vsel %vm89_vm0, %v138_v28, 0.0  ;;  %v145_v39 = vsel %vm89_vm0, %v139_v29, 0.0  ;;  %v99_v40 = vperm.slane %v69_v2, 1 }
  0x15   :  { %v142_v38 = vadd.f32 %v141_v36, %v140_v35  ;;  %v100_v41 = vperm.slane %v69_v2, 5  ;;  %v94_v42 = vadd.f32 %v93_v32, %v92_v34  ;;  %v101_v43 = vperm.slane %v70_v3, 1 }
  0x16   :  { %v102_v44 = vperm.slane %v70_v3, 5  ;;  %v149_v45 = vsel %vm89_vm0, %v65_v0, 0.0  ;;  %v107_v47 = vperm.slane %v99_v40, 1  ;;  %v150_v49 = vsel %vm89_vm0, %v66_v1, 0.0 }
  0x17   :  { %v144_v46 = vadd.f32 %v143_v37, %v142_v38  ;;  %v108_v48 = vperm.slane %v100_v41, 1  ;;  %v96_v50 = vadd.f32 %v95_v33, %v94_v42  ;;  %v109_v51 = vperm.slane %v101_v43, 1 }
  0x18   :  { %v110_v52 = vperm.slane %v102_v44, 1  ;;  %v151_v53 = vadd.f32 %v150_v49, %v149_v45  ;;  %v111_v55 = vmul.f32 %v107_v47, %v65_v0  ;;  %v152_v57 = vsel %vm89_vm0, %v67_v4, 0.0 }
  0x19   :  { %v146_v54 = vadd.f32 %v145_v39, %v144_v46  ;;  %v112_v56 = vmul.f32 %v108_v48, %v66_v1  ;;  %97 = vadd.xlane.f32.xlu0 %v96_v50  ;;  %v113_v58 = vmul.f32 %v109_v51, %v67_v4  ;;  %v154_v3 = vsel %vm89_vm0, %v68_v9, 0.0 }
  0x1a   :  { %v114_v59 = vmul.f32 %v110_v52, %v68_v9  ;;  %v115_v60 = vsel %vm89_vm0, %v111_v55, 0.0  ;;  %v153_v62 = vadd.f32 %v152_v57, %v151_v53  ;;  %v235_v4 = vmov 0.0  }
  0x1b   :  { %147 = vadd.xlane.f32.xlu1 %v146_v54  ;;  %v116_v61 = vsel %vm89_vm0, %v112_v56, 0.0  ;;  %v118_v2 = vsel %vm89_vm0, %v113_v58, 0.0  ;;  %64 = vst.msk [vmem:[%s284_s2] sm:$0x3f] %vm63_vm1, %v235_v4  ;;  %vm159_vm2 = vcmask 7168   ;;  %vm161_vm3 = vcmask 15360  }
  0x1c   :  { %v117_v63 = vadd.f32 %v116_v61, %v115_v60  ;;  %v120_v5 = vsel %vm89_vm0, %v114_v59, 0.0  ;;  %v155_v1 = vadd.f32 %v154_v3, %v153_v62  ;;  %vm163_vm4 = vcmask 23552  }
  0x1e   :  { %v119_v0 = vadd.f32 %v118_v2, %v117_v63 }
  0x20   :  { %v121_v6 = vadd.f32 %v120_v5, %v119_v0 }
  0x22   :  { %122 = vadd.xlane.f32.xlu0 %v121_v6  ;;  %v158_v12 = vld [vmem:[%s284_s2] sm:$0x3f] }
  0x23   :  { %156 = vadd.xlane.f32.xlu1 %v155_v1 }
  0x8c   :  { %v98_v7 = vpop.xlane.xlu0 %97 }
  0x8e   :  { %v148_v8 = vpop.xlane.xlu1 %147 }
  0x95   :  { %v123_v10 = vpop.xlane.xlu0 %122 }
  0x96   :  { %v160_v9 = vsel %vm159_vm2, %v98_v7, %v123_v10  ;;  %v157_v11 = vpop.xlane.xlu1 %156 }
  0x97   :  { %v162_v13 = vsel %vm161_vm3, %v160_v9, %v148_v8 }
  0x98   :  { %v164_v14 = vsel %vm163_vm4, %v162_v13, %v157_v11 }
  0x99   :  { %v165_v15 = vadd.f32 %v164_v14, %v158_v12 }
  0x9b   :  { %167 = vst.msk [vmem:[%s284_s2] sm:$0x3f] %vm63_vm1, %v165_v15 }
  0x9c   :  { %172 = vsyncpa [#allocation3], 1 }
  0x9d   :  { %173 = vsyncpa [#allocation5], 1 }

</bundles_post_ra>
